<compile_context>
chip_gen: v5e
topology: v5e:2x2
jax: 0.10.0
libtpu: 0.0.40
codegen_flags: <defaults>
</compile_context>

<pallas_src>
import math

import jax
import jax.numpy as jnp
from jax import lax
from jax.experimental import pallas as pl
from jax.experimental.pallas import tpu as pltpu  # noqa: F401 (CompilerParams if needed)


def _round_up(x, m):
    return (x + m - 1) // m * m


# ---------------------------------------------------------------------------
# Kernels
# ---------------------------------------------------------------------------
def rnn_cell_kernel(a_ref, w_ref, y_ref):
    """Single step, fully folded:  y = tanh( [x, h, 1] @ [Wx; Wh; b] ).
       columns [0, H)   of y -> new hidden state
       columns [H, H+O) of y -> output
    """
    y_ref[...] = jnp.tanh(
        jnp.dot(a_ref[...], w_ref[...], preferred_element_type=jnp.float32))


def rnn_seq_kernel(x_ref, h0_ref, wx_ref, wh_ref, b_ref, y_ref, *,
                   seq_len, b_pad):
    """Whole sequence in one kernel invocation (grid=()).

    Phase 1 (time-parallel): hoisted input projection + bias for all
    timesteps as one big matmul, staged directly into the output slab.
    Phase 2 (serial): only h @ Wh on the recurrence critical path; the
    hidden state is the FULL 128-lane slab carried as a vreg value (Wh's
    zero-padded rows kill the non-hidden columns), so no masked stores.
    """
    # Phase 1: xw[t] = x[t] @ Wx + b, for all t at once.
    y_ref[...] = (jnp.dot(x_ref[...], wx_ref[...],
                          preferred_element_type=jnp.float32)
                  + b_ref[...])

    # Phase 2: serial recurrence.
    def body(t, h):
        row = pl.multiple_of(t * b_pad, b_pad)
        y = jnp.tanh(y_ref[pl.ds(row, b_pad), :]
                     + jnp.dot(h, wh_ref[...],
                               preferred_element_type=jnp.float32))
        y_ref[pl.ds(row, b_pad), :] = y
        return y                      # full-vreg carry, no lane slicing

    lax.fori_loop(0, seq_len, body, h0_ref[...], unroll=True)


# ---------------------------------------------------------------------------
# Parameter fusion / layout preparation (done once, outside the kernels)
# ---------------------------------------------------------------------------
def fuse_params(params, input_size, hidden_size, output_size, lane=128):
    I, H, O = input_size, hidden_size, output_size
    N = H + O
    n_pad = max(_round_up(N, lane), lane)

    # Fold h2h o i2h (exact algebra, no nonlinearity in between):
    #   h2h(i2h(c)) = c @ (w_h2h @ w_i2h).T + (b_i2h @ w_h2h.T + b_h2h)
    w_eff = params["w_h2h"] @ params["w_i2h"]                        # (H, I+H)
    b_eff = params["b_i2h"] @ params["w_h2h"].T + params["b_h2h"]    # (1, H)

    # Stack hidden-path and output-path weights, pre-transposed to (in, out).
    w_all = jnp.concatenate([w_eff.T, params["w_i2o"].T], axis=1)    # (I+H, N)
    b_all = jnp.concatenate([b_eff, params["b_i2o"]], axis=1)        # (1, N)

    # Sequence-path weights.
    wx = jnp.zeros((I, n_pad), jnp.float32).at[:, :N].set(w_all[:I])
    # Wh padded to (n_pad, n_pad): rows [H, n_pad) are zero so the full
    # activation slab can be carried as the recurrent state unmasked.
    wh = jnp.zeros((n_pad, n_pad), jnp.float32).at[:H, :N].set(w_all[I:])
    b = jnp.zeros((1, n_pad), jnp.float32).at[:, :N].set(b_all)

    # Single-step fused weight: [Wx ; Wh ; b] (bias folded via a ones column).
    K = I + H + 1
    k_pad = _round_up(K, 8)
    w_cell = jnp.zeros((k_pad, n_pad), jnp.float32)
    w_cell = w_cell.at[:I, :N].set(w_all[:I])
    w_cell = w_cell.at[I:I + H, :N].set(w_all[I:])
    w_cell = w_cell.at[I + H, :N].set(b_all[0])

    return {"wx": wx, "wh": wh, "b": b, "w_cell": w_cell,
            "n_pad": n_pad, "k_pad": k_pad}


# ---------------------------------------------------------------------------
# Wrappers
# ---------------------------------------------------------------------------
def rnn_cell_forward(x, h, fused, input_size, hidden_size, output_size):
    """Single step (the module's forward).  x: (B, I), h: (B, H) ->
    (output (B, O), new hidden (B, H)).  One matmul, two input DMAs."""
    B = x.shape[0]
    I, H, O = input_size, hidden_size, output_size
    n_pad, k_pad = fused["n_pad"], fused["k_pad"]
    b_pad = max(_round_up(B, 8), 8)

    a = jnp.zeros((b_pad, k_pad), jnp.float32)
    a = a.at[:B, :I].set(x).at[:B, I:I + H].set(h).at[:B, I + H].set(1.0)

    full = lambda shape: pl.BlockSpec(shape, lambda: (0,) * len(shape))

    y = pl.pallas_call(
        rnn_cell_kernel,
        out_shape=jax.ShapeDtypeStruct((b_pad, n_pad), jnp.float32),
        grid=(),
        in_specs=[full((b_pad, k_pad)),      # [x, h, 1]
                  full((k_pad, n_pad))],     # [Wx; Wh; b]
        out_specs=full((b_pad, n_pad)),
    )(a, fused["w_cell"])

    hidden = y[:B, :H]
    output = y[:B, H:H + O]
    return output, hidden


def rnn_sequence_forward(x_seq, h0, fused, input_size, hidden_size,
                         output_size):
    """Whole sequence in one kernel launch (grid=(), fully VMEM-resident).
    x_seq: (T, B, I), h0: (B, H) -> (outputs (T, B, O), final hidden (B, H))."""
    T, B, I = x_seq.shape
    H, O = hidden_size, output_size
    n_pad = fused["n_pad"]
    b_pad = max(_round_up(B, 8), 8)

    # Pad once, flatten time into the sublane axis so the kernel needs no
    # reshape and the hoisted projection is a single (T*b_pad, I) matmul.
    x_p = (jnp.zeros((T, b_pad, I), jnp.float32)
           .at[:, :B].set(x_seq)
           .reshape(T * b_pad, I))
    h_p = jnp.zeros((b_pad, n_pad), jnp.float32).at[:B, :H].set(h0)

    full = lambda shape: pl.BlockSpec(shape, lambda: (0,) * len(shape))

    def kernel(x_ref, h0_ref, wx_ref, wh_ref, b_ref, y_ref):
        rnn_seq_kernel(x_ref, h0_ref, wx_ref, wh_ref, b_ref, y_ref,
                       seq_len=T, b_pad=b_pad)

    y = pl.pallas_call(
        kernel,
        out_shape=jax.ShapeDtypeStruct((T * b_pad, n_pad), jnp.float32),
        grid=(),
        in_specs=[
            full((T * b_pad, I)),    # x (all timesteps, resident)
            full((b_pad, n_pad)),    # h0 (padded to full lane width)
            full((I, n_pad)),        # Wx
            full((n_pad, n_pad)),    # Wh (zero rows beyond H)
            full((1, n_pad)),        # b
        ],
        out_specs=full((T * b_pad, n_pad)),
    )(x_p, h_p, fused["wx"], fused["wh"], fused["b"])

    y = y.reshape(T, b_pad, n_pad)
    outputs = y[:, :B, H:H + O]
    hidden = y[T - 1, :B, :H]
    return outputs, hidden


# ---------------------------------------------------------------------------
# Init + reference
# ---------------------------------------------------------------------------
def init_params(key, input_size, hidden_size, output_size):
    """Deterministic init mimicking nn.Linear's U(-1/sqrt(fan_in), 1/sqrt(fan_in))."""
    ks = jax.random.split(key, 6)

    def linear(kw, kb, out_f, in_f):
        bound = 1.0 / math.sqrt(in_f)
        w = jax.random.uniform(kw, (out_f, in_f), jnp.float32, -bound, bound)
        b = jax.random.uniform(kb, (1, out_f), jnp.float32, -bound, bound)
        return w, b

    w_i2h, b_i2h = linear(ks[0], ks[1], hidden_size, input_size + hidden_size)
    w_h2h, b_h2h = linear(ks[2], ks[3], hidden_size, hidden_size)
    w_i2o, b_i2o = linear(ks[4], ks[5], output_size, input_size + hidden_size)
    return {
        "w_i2h": w_i2h, "b_i2h": b_i2h,
        "w_h2h": w_h2h, "b_h2h": b_h2h,
        "w_i2o": w_i2o, "b_i2o": b_i2o,
    }


def reference_forward(x, h, p):
    combined = jnp.concatenate([x, h], axis=1)
    hid = jnp.tanh((combined @ p["w_i2h"].T + p["b_i2h"]) @ p["w_h2h"].T
                   + p["b_h2h"])
    out = jnp.tanh(combined @ p["w_i2o"].T + p["b_i2o"])
    return out, hid


if __name__ == "__main__":
    batch = 2
    input_size = 16
    hidden_size = 32
    output_size = 8
    seq_len = 8

    key = jax.random.PRNGKey(0)
    k_params, k_x, k_seq = jax.random.split(key, 3)
    params = init_params(k_params, input_size, hidden_size, output_size)
    fused = fuse_params(params, input_size, hidden_size, output_size)

    # --- single step (the module's forward) ---
    x = jax.random.normal(k_x, (batch, input_size), jnp.float32)
    h0 = jnp.zeros((batch, hidden_size), jnp.float32)   # init_hidden

    out, hid = rnn_cell_forward(x, h0, fused, input_size, hidden_size,
                                output_size)
    out = jax.block_until_ready(out)
    hid = jax.block_until_ready(hid)

    ref_out, ref_hid = reference_forward(x, h0, params)
    assert jnp.allclose(out, ref_out, atol=2e-5), "single-step output mismatch"
    assert jnp.allclose(hid, ref_hid, atol=2e-5), "single-step hidden mismatch"

    # --- fused sequence (whole time loop inside one kernel) ---
    x_seq = jax.random.normal(k_seq, (seq_len, batch, input_size), jnp.float32)
    outs, hid_T = rnn_sequence_forward(x_seq, h0, fused, input_size,
                                       hidden_size, output_size)
    outs = jax.block_until_ready(outs)
    hid_T = jax.block_until_ready(hid_T)

    h_ref = h0
    ref_outs = []
    for t in range(seq_len):
        o_t, h_ref = reference_forward(x_seq[t], h_ref, params)
        ref_outs.append(o_t)
    ref_outs = jnp.stack(ref_outs, 0)
    assert jnp.allclose(outs, ref_outs, atol=2e-5), "sequence output mismatch"
    assert jnp.allclose(hid_T, h_ref, atol=2e-5), "sequence hidden mismatch"

    print("KERNEL_OK")
</pallas_src>

<mosaic_0001>
module attributes {stable_mosaic.version = 11 : i64} {
  func.func @rnn_cell_kernel(%arg0: memref<8x56xf32, #tpu.memory_space<vmem>>, %arg1: memref<56x128xf32, #tpu.memory_space<vmem>>, %arg2: memref<8x128xf32, #tpu.memory_space<vmem>>) attributes {dimension_semantics = [], scalar_prefetch = 0 : i64, scratch_operands = 0 : i64, tpu.core_type = #tpu.core_type<tc>} {
    %c0 = arith.constant 0 : index
    %c0_0 = arith.constant 0 : index
    %0 = vector.load %arg0[%c0, %c0_0] : memref<8x56xf32, #tpu.memory_space<vmem>>, vector<8x56xf32>
    %c0_1 = arith.constant 0 : index
    %c0_2 = arith.constant 0 : index
    %1 = vector.load %arg1[%c0_1, %c0_2] : memref<56x128xf32, #tpu.memory_space<vmem>>, vector<56x128xf32>
    %cst = arith.constant dense<0.000000e+00> : vector<8x128xf32>
    %2 = tpu.matmul %0, %1, %cst {dimension_numbers = #tpu.dot_dimension_numbers<[1], [0], [0], [1], [0, 0, 1, 1], [], []>} : vector<8x56xf32>, vector<56x128xf32>, vector<8x128xf32> -> vector<8x128xf32>
    %3 = math.tanh %2 : vector<8x128xf32>
    %c0_3 = arith.constant 0 : index
    %c0_4 = arith.constant 0 : index
    %4 = vector.load %arg2[%c0_3, %c0_4] : memref<8x128xf32, #tpu.memory_space<vmem>>, vector<8x128xf32>
    tpu.vector_store %arg2[%c0_3, %c0_4], %3 {strides = array<i32>} : memref<8x128xf32, #tpu.memory_space<vmem>>, vector<8x128xf32>,
    return
  }
}

</mosaic_0001>

<bundles_post_ra>
// kernel: tpu_custom_call.1
= control target key start
LH: loop header
LB: loop body
LE: loop exit
PB: predicated region body
PF: predicated region fallthrough
CT: control target
= control target key end

     0   :  { %7 = vsyncpa [#allocation3], 0  ;;  %s209_s0 = inlined_call_operand.hbm [shape: f32[8,56], index: 0, kind: input, shape index: {}]   ;;  %s210_s1 = inlined_call_operand.hbm [shape: f32[56,128], index: 1, kind: input, shape index: {}]   ;;  %s211_s2 = inlined_call_operand.hbm [shape: f32[8,128], index: 2, kind: output, shape index: {}]  }
   0x1   :  { %8 = vsyncpa [#allocation6], 0 }
   0x2   :  { %9 = vsyncpa [#allocation4], 0  ;;  %s15_s11 = sshll.u32 %s209_s0, 4  ;;  %s180_s12 = smov [#allocation2]   ;;  %s16_s11 = int_to_ptr.hbm [resolvable:$true] %s15_s11 }
   0x3   :  { %s17_s13 = sshll.u32 %s180_s12, 4  ;;  %s25_s16 = sshll.u32 %s210_s1, 4  ;;  %s18_s13 = int_to_ptr.vmem [resolvable:$true] %s17_s13  ;;  %s26_s16 = int_to_ptr.hbm [resolvable:$true] %s25_s16 }
   0x4   :  { %20 = dma.hbm_to_vmem [thread:$0]  %s16_s11, 128, %s18_s13, [#allocation3]  }
   0x5   :  { %s181_s17 = smov [#allocation5]   ;;  %s182_s19 = smov 128  }
   0x6   :  { %s27_s18 = sshll.u32 %s181_s17, 4  ;;  %s183_s20 = smov 8   ;;  %s28_s18 = int_to_ptr.vmem [resolvable:$true] %s27_s18 }
   0x7   :  { %33 = dma.hbm_to_vmem [thread:$0]  %s26_s16, 896, %s28_s18, [#allocation6], %s182_s19, %s182_s19, %s183_s20  }
   0x8   :  { %174 = dma.done.wait [#allocation3], 128  }
   0x9   :  { %175 = vsyncadd [#allocation3], 4294967168 }
   0xa   :  { %176 = dma.done.wait [#allocation6], 896  }
   0xb   :  { %177 = vsyncadd [#allocation6], 4294966400  ;;  %v49_v0 = vld [vmem:[#allocation5 + $0x30] sm:$0xff]  ;;  %v48_v1 = vld [vmem:[#allocation5 + $0x28] sm:$0xff]  ;;  %vm50_vm0 = vcmask 457728   ;;  %s184_s0 = smov [#allocation7]  }
   0xc   :  { %63 = vmatpush.msra.mxu0 %v49_v0  ;;  %v47_v2 = vld [vmem:[#allocation5 + $0x20] sm:$0xff]  ;;  %v46_v3 = vld [vmem:[#allocation5 + $0x18] sm:$0xff]  ;;  %v45_v4 = vld [vmem:[#allocation5 + $0x10] sm:$0xff]  ;;  %s81_s1 = sshll.u32 %s184_s0, 4  ;;  %s83_s23 = sshll.u32 %s211_s2, 4  ;;  %s82_s1 = int_to_ptr.vmem [resolvable:$true] %s81_s1  ;;  %s84_s23 = int_to_ptr.hbm [resolvable:$true] %s83_s23 }
   0xd   :  { %v44_v5 = vld [vmem:[#allocation5 + $0x8] sm:$0xff]  ;;  %v43_v6 = vld [vmem:[#allocation5] sm:$0xff]  ;;  %v42_v7 = vld [vmem:[#allocation2] sm:$0xff] }
   0xe   :  { %64 = vmatpush.msra.mxu0 %v48_v1 }
  0x10   :  { %65 = vmatpush.msra.mxu0 %v47_v2 }
  0x12   :  { %66 = vmatpush.msra.mxu0 %v46_v3 }
  0x14   :  { %67 = vmatpush.msra.mxu0 %v45_v4 }
  0x16   :  { %68 = vmatpush.msra.mxu0 %v44_v5 }
  0x18   :  { %69 = vmatpush.msra.mxu0 %v43_v6 }
  0x19   :  { %94 = vmatmul.msk.f32.vlgmr.msra.gmra.mxu0 %vm50_vm0, %v42_v7 }
  0x96   :  { %v71_v8 = vpop.f32.mrf.mxu0 }
  0x97   :  { %100 = vtanh.f32 %v71_v8 }
  0x9d   :  { %v101_v9 = vpop.eup %100 }
  0x9e   :  { %75 = vst [vmem:[#allocation7] sm:$0xff] %v101_v9 }
  0x9f   :  { %86 = dma.vmem_to_hbm [thread:$0]  %s82_s1, 128, %s84_s23, [#allocation4]  }
  0xa0   :  { %178 = dma.done.wait [#allocation4], 128  }
  0xa1   :  { %179 = vsyncadd [#allocation4], 4294967168 }
  0xa2   :  { %91 = vsyncpa [#allocation3], 1 }
  0xa3   :  { %92 = vsyncpa [#allocation6], 1 }
  0xa4   :  { %93 = vsyncpa [#allocation4], 1 }

</bundles_post_ra>
